<compile_context>
chip_gen: v5e
topology: v5e:2x2
jax: 0.10.0
libtpu: 0.0.40
codegen_flags: <defaults>
</compile_context>

<pallas_src>
import jax
import jax.numpy as jnp
from jax.experimental import pallas as pl
from jax.experimental.pallas import tpu as pltpu


# ---------------------------------------------------------------------------
# Fused decode kernel: grid=(B//Bt, T), state carried in VMEM scratch over t.
# ---------------------------------------------------------------------------
def _sat_decode_kernel(
    # inputs (all resident per batch tile; nothing re-DMA'd over t)
    pv_ref, v_ref, gix_ref, h0_ref, s0_ref,
    w_if_ref, w_i_ref, w_h_ref, b_h_ref,
    # output (resident (T, Bt, E) block, written back once per batch tile)
    hseq_ref,
    # scratch (persistent across grid steps)
    hatt_sc, hgru_sc,
):
    f32 = jnp.float32
    t = pl.program_id(1)                      # time = innermost grid axis
    E = h0_ref.shape[-1]

    @pl.when(t == 0)
    def _init():
        hatt_sc[...] = h0_ref[...]            # initial `hiddens` (attention query)
        hgru_sc[...] = s0_ref[...]            # initial GRU `states`

    h_att = hatt_sc[...]                      # (Bt, E)
    h_gru = hgru_sc[...]                      # (Bt, E)

    # ---- soft attention over the N regions (fc_I_v(V) precomputed -> pv) ----
    content = pv_ref[...] + h_att[:, None, :]                      # (Bt, N, E)
    scores = jnp.sum(jnp.tanh(content) * w_if_ref[...], axis=-1)   # (Bt, N)
    m = jnp.max(scores, axis=-1, keepdims=True)
    e = jnp.exp(scores - m)
    alpha = e / jnp.sum(e, axis=-1, keepdims=True)                 # softmax over N

    # attended image feature: broadcast-multiply + sublane reduce (VPU/XLU);
    # avoids M=Bt MXU dots that waste the systolic array at tiny batch.
    att_feat = jnp.sum(alpha[:, :, None] * v_ref[...], axis=1)     # (Bt, F)

    # ---- GRU cell (gate order r|z|n along the fused 3E output dim) ----------
    # gi_x = x_t @ W_x + b_ih was precomputed for all T in the wrapper.
    gi = gix_ref[t] + jnp.dot(att_feat, w_i_ref[...],
                              preferred_element_type=f32)          # (Bt, 3E)
    gh = jnp.dot(h_gru, w_h_ref[...],
                 preferred_element_type=f32) + b_h_ref[...]        # (Bt, 3E)

    r = jax.nn.sigmoid(gi[:, :E] + gh[:, :E])
    z = jax.nn.sigmoid(gi[:, E:2 * E] + gh[:, E:2 * E])
    n = jnp.tanh(gi[:, 2 * E:] + r * gh[:, 2 * E:])                # b_hn inside r*(.)
    h_new = (1.0 - z) * n + z * h_gru                              # (Bt, E)

    hseq_ref[t] = h_new                       # row t of the resident output block
    hatt_sc[...] = h_new                      # next step's `hiddens`
    hgru_sc[...] = h_new                      # next step's `states`


# ---------------------------------------------------------------------------
# Parameters in PyTorch layout (deterministic, synthetic)
# ---------------------------------------------------------------------------
def make_params(key, vocab_size, img_feat_size, hidden_size):
    F, E = img_feat_size, hidden_size
    ks = jax.random.split(key, 7)
    s = 0.1
    return dict(
        w_Iv=s * jax.random.normal(ks[0], (E, F), jnp.float32),   # fc_I_v.weight (no bias)
        w_IF=s * jax.random.normal(ks[1], (1, E), jnp.float32),   # fc_I_F.weight (no bias)
        emb=s * jax.random.normal(ks[2], (vocab_size + 1, E), jnp.float32),
        gru_w_ih=s * jax.random.normal(ks[3], (3 * E, E + F), jnp.float32),  # r|z|n
        gru_w_hh=s * jax.random.normal(ks[4], (3 * E, E), jnp.float32),
        gru_b_ih=s * jax.random.normal(ks[5], (3 * E,), jnp.float32),
        gru_b_hh=s * jax.random.normal(ks[6], (3 * E,), jnp.float32),
    )


# ---------------------------------------------------------------------------
# Wrapper: one pallas_call for all T timesteps (teacher forcing), feeding
# (hiddens, states) from each step into the next — equivalent to calling the
# PyTorch forward T times with its outputs fed back.
# ---------------------------------------------------------------------------
@jax.jit
def show_attend_tell_decode(params, V, v_g, captions, hiddens0, states0):
    del v_g  # present in the PyTorch signature but unused by ShowAttendTellCore
    B, N, F = V.shape
    E = params["w_Iv"].shape[0]
    T = captions.shape[1]
    f32 = jnp.float32

    Vf = V.astype(f32)
    w_ih = params["gru_w_ih"]                 # (3E, E+F), rows ordered r|z|n
    W_x = w_ih[:, :E].T                       # (E, 3E)  x_t part
    W_i = w_ih[:, E:].T                       # (F, 3E)  attended-feature part
    W_h = params["gru_w_hh"].T                # (E, 3E)

    # Hoisted time-invariant precomputes (XLA, outside the recurrent chain):
    pv = jnp.einsum("bnf,ef->bne", Vf, params["w_Iv"])            # fc_I_v(V)  (B,N,E)
    xt_seq = jnp.take(params["emb"], captions.T, axis=0)          # (T,B,E)
    gi_x = (jnp.einsum("tbe,ek->tbk", xt_seq, W_x)
            + params["gru_b_ih"][None, None, :])                  # (T,B,3E)
    b_hh = params["gru_b_hh"].reshape(1, 3 * E)
    h0 = hiddens0.reshape(B, E).astype(f32)
    s0 = states0.reshape(B, E).astype(f32)

    # Batch tile: Bt == B at demo size; tile B (multiple of 8) on v7x to use
    # both TensorCores and halve per-core VMEM residency.
    bt = B
    nb = B // bt
    grid = (nb, T)                            # time innermost -> scratch carry valid

    bsl2 = lambda b, t: (b, 0)
    bsl3 = lambda b, t: (b, 0, 0)
    const2 = lambda b, t: (0, 0)

    in_specs = [
        pl.BlockSpec((bt, N, E), bsl3),                       # pv       (resident)
        pl.BlockSpec((bt, N, F), bsl3),                       # V        (resident)
        pl.BlockSpec((T, bt, 3 * E), lambda b, t: (0, b, 0)), # gi_x all T (resident)
        pl.BlockSpec((bt, E), bsl2),                          # hiddens0
        pl.BlockSpec((bt, E), bsl2),                          # states0
        pl.BlockSpec((1, E), const2),                         # fc_I_F weight row
        pl.BlockSpec((F, 3 * E), const2),                     # W_i (fused gates)
        pl.BlockSpec((E, 3 * E), const2),                     # W_h (fused gates)
        pl.BlockSpec((1, 3 * E), const2),                     # b_hh
    ]
    # Output block constant over t -> stays VMEM-resident, one writeback per tile.
    out_spec = pl.BlockSpec((T, bt, E), lambda b, t: (0, b, 0))

    hseq = pl.pallas_call(
        _sat_decode_kernel,
        out_shape=jax.ShapeDtypeStruct((T, B, E), f32),
        grid_spec=pltpu.PrefetchScalarGridSpec(
            num_scalar_prefetch=0,
            grid=grid,
            in_specs=in_specs,
            out_specs=out_spec,
            scratch_shapes=[
                pltpu.VMEM((bt, E), f32),     # `hiddens` carried across steps
                pltpu.VMEM((bt, E), f32),     # GRU `states` carried across steps
            ],
        ),
        compiler_params=pltpu.CompilerParams(
            dimension_semantics=("parallel", "arbitrary")),
    )(pv, Vf, gi_x, h0, s0, params["w_IF"], W_i, W_h, b_hh)

    hiddens_all = jnp.transpose(hseq, (1, 0, 2))   # (B, T, E)
    states_final = hseq[T - 1][None]               # (1, B, E)
    return hiddens_all, states_final


# ---------------------------------------------------------------------------
# Pure-JAX per-step reference (mirrors the PyTorch forward exactly)
# ---------------------------------------------------------------------------
def reference_step(params, time, V, captions, states, hiddens):
    E = params["w_Iv"].shape[0]
    content_v = jnp.einsum("bnf,ef->bne", V, params["w_Iv"]) + hiddens    # (B,N,E)
    z_v = jnp.einsum("bne,oe->bno", jnp.tanh(content_v), params["w_IF"])[..., 0]
    alpha = jax.nn.softmax(z_v, axis=1)                                    # (B,N)
    att = jnp.einsum("bn,bnf->bf", alpha, V)                               # (B,F)
    it = captions[:, time]
    x_t = jnp.take(params["emb"], it, axis=0)                              # (B,E)
    inp = jnp.concatenate([x_t, att], axis=1)                              # (B,E+F)
    h = states[0]
    gi = inp @ params["gru_w_ih"].T + params["gru_b_ih"]
    gh = h @ params["gru_w_hh"].T + params["gru_b_hh"]
    r = jax.nn.sigmoid(gi[:, :E] + gh[:, :E])
    z = jax.nn.sigmoid(gi[:, E:2 * E] + gh[:, E:2 * E])
    n = jnp.tanh(gi[:, 2 * E:] + r * gh[:, 2 * E:])
    h_new = (1.0 - z) * n + z * h
    return h_new[:, None, :], h_new[None, :, :]        # hiddens (B,1,E), states (1,B,E)


# ---------------------------------------------------------------------------
if __name__ == "__main__":
    B, N, F, E = 2, 49, 64, 32     # batch, 7*7 regions, img_feat_size, hidden_size
    VOCAB, T = 20, 8

    key = jax.random.PRNGKey(0)
    kp, kv, kvg, kc, kh, ks = jax.random.split(key, 6)
    params = make_params(kp, VOCAB, F, E)

    V = jax.random.normal(kv, (B, N, F), jnp.float32)
    v_g = jax.random.normal(kvg, (B, F), jnp.float32)          # unused by this core
    captions = jax.random.randint(kc, (B, T), 0, VOCAB + 1, dtype=jnp.int32)
    hiddens0 = 0.1 * jax.random.normal(kh, (B, 1, E), jnp.float32)
    states0 = 0.1 * jax.random.normal(ks, (1, B, E), jnp.float32)

    hidd_all, states_fin = show_attend_tell_decode(
        params, V, v_g, captions, hiddens0, states0)
    jax.block_until_ready((hidd_all, states_fin))

    # Reference: call the per-step forward T times, feeding (hiddens, states) back.
    hiddens, states = hiddens0, states0
    ref_steps = []
    for t in range(T):
        hiddens, states = reference_step(params, t, V, captions, states, hiddens)
        ref_steps.append(hiddens)
    ref_all = jnp.concatenate(ref_steps, axis=1)               # (B, T, E)

    assert jnp.allclose(hidd_all, ref_all, atol=3e-5), "hiddens mismatch"
    assert jnp.allclose(states_fin, states, atol=3e-5), "states mismatch"
    print("KERNEL_OK")
</pallas_src>

<mosaic_0001>
module attributes {stable_mosaic.version = 11 : i64} {
  func.func @_sat_decode_kernel(%arg0: i32, %arg1: i32, %arg2: memref<2x49x32xf32, #tpu.memory_space<vmem>>, %arg3: memref<2x49x64xf32, #tpu.memory_space<vmem>>, %arg4: memref<8x2x96xf32, #tpu.memory_space<vmem>>, %arg5: memref<2x32xf32, #tpu.memory_space<vmem>>, %arg6: memref<2x32xf32, #tpu.memory_space<vmem>>, %arg7: memref<1x32xf32, #tpu.memory_space<vmem>>, %arg8: memref<64x96xf32, #tpu.memory_space<vmem>>, %arg9: memref<32x96xf32, #tpu.memory_space<vmem>>, %arg10: memref<1x96xf32, #tpu.memory_space<vmem>>, %arg11: memref<8x2x32xf32, #tpu.memory_space<vmem>>, %arg12: memref<2x32xf32, #tpu.memory_space<vmem>>, %arg13: memref<2x32xf32, #tpu.memory_space<vmem>>) attributes {dimension_semantics = [#tpu.dimension_semantics<parallel>, #tpu.dimension_semantics<arbitrary>], iteration_bounds = array<i64: 1, 8>, scalar_prefetch = 0 : i64, scratch_operands = 2 : i64, tpu.core_type = #tpu.core_type<tc>, window_params = [{transform_indices = @transform_0, window_bounds = array<i64: 2, 49, 32>}, {transform_indices = @transform_1, window_bounds = array<i64: 2, 49, 64>}, {transform_indices = @transform_2, window_bounds = array<i64: 8, 2, 96>}, {transform_indices = @transform_3, window_bounds = array<i64: 2, 32>}, {transform_indices = @transform_4, window_bounds = array<i64: 2, 32>}, {pipeline_mode = #tpu.pipeline_mode<synchronous>, transform_indices = @transform_5, window_bounds = array<i64: 1, 32>}, {pipeline_mode = #tpu.pipeline_mode<synchronous>, transform_indices = @transform_6, window_bounds = array<i64: 64, 96>}, {pipeline_mode = #tpu.pipeline_mode<synchronous>, transform_indices = @transform_7, window_bounds = array<i64: 32, 96>}, {pipeline_mode = #tpu.pipeline_mode<synchronous>, transform_indices = @transform_8, window_bounds = array<i64: 1, 96>}, {transform_indices = @transform_9, window_bounds = array<i64: 8, 2, 32>}]} {
    %c0_i32 = arith.constant 0 : i32
    %0 = arith.cmpi eq, %arg1, %c0_i32 : i32
    %1 = arith.extui %0 : i1 to i32
    %c0_i32_0 = arith.constant 0 : i32
    %2 = arith.cmpi ne, %1, %c0_i32_0 : i32
    scf.if %2 {
      %c0_34 = arith.constant 0 : index
      %c0_35 = arith.constant 0 : index
      %72 = vector.load %arg5[%c0_34, %c0_35] : memref<2x32xf32, #tpu.memory_space<vmem>>, vector<2x32xf32>
      %c0_36 = arith.constant 0 : index
      %c0_37 = arith.constant 0 : index
      %73 = vector.load %arg12[%c0_36, %c0_37] : memref<2x32xf32, #tpu.memory_space<vmem>>, vector<2x32xf32>
      tpu.vector_store %arg12[%c0_36, %c0_37], %72 {strides = array<i32>} : memref<2x32xf32, #tpu.memory_space<vmem>>, vector<2x32xf32>,
      %c0_38 = arith.constant 0 : index
      %c0_39 = arith.constant 0 : index
      %74 = vector.load %arg6[%c0_38, %c0_39] : memref<2x32xf32, #tpu.memory_space<vmem>>, vector<2x32xf32>
      %c0_40 = arith.constant 0 : index
      %c0_41 = arith.constant 0 : index
      %75 = vector.load %arg13[%c0_40, %c0_41] : memref<2x32xf32, #tpu.memory_space<vmem>>, vector<2x32xf32>
      tpu.vector_store %arg13[%c0_40, %c0_41], %74 {strides = array<i32>} : memref<2x32xf32, #tpu.memory_space<vmem>>, vector<2x32xf32>,
    } else {
    }
    %c0 = arith.constant 0 : index
    %c0_1 = arith.constant 0 : index
    %3 = vector.load %arg12[%c0, %c0_1] : memref<2x32xf32, #tpu.memory_space<vmem>>, vector<2x32xf32>
    %c0_2 = arith.constant 0 : index
    %c0_3 = arith.constant 0 : index
    %4 = vector.load %arg13[%c0_2, %c0_3] : memref<2x32xf32, #tpu.memory_space<vmem>>, vector<2x32xf32>
    %c0_4 = arith.constant 0 : index
    %c0_5 = arith.constant 0 : index
    %c0_6 = arith.constant 0 : index
    %5 = vector.load %arg2[%c0_4, %c0_5, %c0_6] : memref<2x49x32xf32, #tpu.memory_space<vmem>>, vector<2x49x32xf32>
    %6 = vector.shape_cast %3 : vector<2x32xf32> to vector<2x1x32xf32>
    %7 = vector.broadcast %6 : vector<2x1x32xf32> to vector<2x49x32xf32>
    %8 = arith.addf %5, %7 : vector<2x49x32xf32>
    %9 = math.tanh %8 : vector<2x49x32xf32>
    %c0_7 = arith.constant 0 : index
    %c0_8 = arith.constant 0 : index
    %10 = vector.load %arg7[%c0_7, %c0_8] : memref<1x32xf32, #tpu.memory_space<vmem>>, vector<1x32xf32>
    %11 = vector.shape_cast %10 : vector<1x32xf32> to vector<1x1x32xf32>
    %12 = vector.broadcast %11 : vector<1x1x32xf32> to vector<2x49x32xf32>
    %13 = arith.mulf %9, %12 : vector<2x49x32xf32>
    %cst = arith.constant dense<0.000000e+00> : vector<2x49xf32>
    %14 = vector.multi_reduction <add>, %13, %cst [2] : vector<2x49x32xf32> to vector<2x49xf32>
    %cst_9 = arith.constant dense<0xFF800000> : vector<2xf32>
    %15 = vector.multi_reduction <maximumf>, %14, %cst_9 [1] : vector<2x49xf32> to vector<2xf32>
    %16 = vector.shape_cast %15 : vector<2xf32> to vector<2x1xf32>
    %17 = vector.broadcast %16 : vector<2x1xf32> to vector<2x49xf32>
    %18 = arith.subf %14, %17 : vector<2x49xf32>
    %19 = math.exp %18 : vector<2x49xf32>
    %cst_10 = arith.constant dense<0.000000e+00> : vector<2xf32>
    %20 = vector.multi_reduction <add>, %19, %cst_10 [1] : vector<2x49xf32> to vector<2xf32>
    %21 = vector.shape_cast %20 : vector<2xf32> to vector<2x1xf32>
    %22 = vector.broadcast %21 : vector<2x1xf32> to vector<2x49xf32>
    %23 = arith.divf %19, %22 : vector<2x49xf32>
    %24 = vector.shape_cast %23 : vector<2x49xf32> to vector<2x49x1xf32>
    %c0_11 = arith.constant 0 : index
    %c0_12 = arith.constant 0 : index
    %c0_13 = arith.constant 0 : index
    %25 = vector.load %arg3[%c0_11, %c0_12, %c0_13] : memref<2x49x64xf32, #tpu.memory_space<vmem>>, vector<2x49x64xf32>
    %26 = vector.broadcast %24 : vector<2x49x1xf32> to vector<2x49x64xf32>
    %27 = arith.mulf %26, %25 : vector<2x49x64xf32>
    %cst_14 = arith.constant dense<0.000000e+00> : vector<2x64xf32>
    %28 = vector.multi_reduction <add>, %27, %cst_14 [1] : vector<2x49x64xf32> to vector<2x64xf32>
    %29 = arith.index_cast %arg1 : i32 to index
    %c0_15 = arith.constant 0 : index
    %c0_16 = arith.constant 0 : index
    %30 = vector.load %arg4[%29, %c0_15, %c0_16] : memref<8x2x96xf32, #tpu.memory_space<vmem>>, vector<1x2x96xf32>
    %31 = vector.shape_cast %30 : vector<1x2x96xf32> to vector<2x96xf32>
    %c0_17 = arith.constant 0 : index
    %c0_18 = arith.constant 0 : index
    %32 = vector.load %arg8[%c0_17, %c0_18] : memref<64x96xf32, #tpu.memory_space<vmem>>, vector<64x96xf32>
    %cst_19 = arith.constant dense<0.000000e+00> : vector<2x96xf32>
    %33 = tpu.matmul %28, %32, %cst_19 {dimension_numbers = #tpu.dot_dimension_numbers<[1], [0], [0], [1], [0, 0, 1, 1], [], []>} : vector<2x64xf32>, vector<64x96xf32>, vector<2x96xf32> -> vector<2x96xf32>
    %34 = arith.addf %31, %33 : vector<2x96xf32>
    %c0_20 = arith.constant 0 : index
    %c0_21 = arith.constant 0 : index
    %35 = vector.load %arg9[%c0_20, %c0_21] : memref<32x96xf32, #tpu.memory_space<vmem>>, vector<32x96xf32>
    %cst_22 = arith.constant dense<0.000000e+00> : vector<2x96xf32>
    %36 = tpu.matmul %4, %35, %cst_22 {dimension_numbers = #tpu.dot_dimension_numbers<[1], [0], [0], [1], [0, 0, 1, 1], [], []>} : vector<2x32xf32>, vector<32x96xf32>, vector<2x96xf32> -> vector<2x96xf32>
    %c0_23 = arith.constant 0 : index
    %c0_24 = arith.constant 0 : index
    %37 = vector.load %arg10[%c0_23, %c0_24] : memref<1x96xf32, #tpu.memory_space<vmem>>, vector<1x96xf32>
    %38 = vector.broadcast %37 : vector<1x96xf32> to vector<2x96xf32>
    %39 = arith.addf %36, %38 : vector<2x96xf32>
    %40 = vector.extract_strided_slice %34 {offsets = [0, 0], sizes = [2, 32], strides = [1, 1]} : vector<2x96xf32> to vector<2x32xf32>
    %41 = vector.extract_strided_slice %39 {offsets = [0, 0], sizes = [2, 32], strides = [1, 1]} : vector<2x96xf32> to vector<2x32xf32>
    %42 = arith.addf %40, %41 : vector<2x32xf32>
    %43 = arith.negf %42 : vector<2x32xf32>
    %44 = math.exp %43 : vector<2x32xf32>
    %cst_25 = arith.constant 1.000000e+00 : f32
    %45 = vector.broadcast %cst_25 : f32 to vector<2x32xf32>
    %46 = arith.addf %45, %44 : vector<2x32xf32>
    %47 = arith.divf %45, %46 : vector<2x32xf32>
    %48 = vector.extract_strided_slice %34 {offsets = [0, 32], sizes = [2, 32], strides = [1, 1]} : vector<2x96xf32> to vector<2x32xf32>
    %49 = vector.extract_strided_slice %39 {offsets = [0, 32], sizes = [2, 32], strides = [1, 1]} : vector<2x96xf32> to vector<2x32xf32>
    %50 = arith.addf %48, %49 : vector<2x32xf32>
    %51 = arith.negf %50 : vector<2x32xf32>
    %52 = math.exp %51 : vector<2x32xf32>
    %cst_26 = arith.constant 1.000000e+00 : f32
    %53 = vector.broadcast %cst_26 : f32 to vector<2x32xf32>
    %54 = arith.addf %53, %52 : vector<2x32xf32>
    %55 = arith.divf %53, %54 : vector<2x32xf32>
    %56 = vector.extract_strided_slice %34 {offsets = [0, 64], sizes = [2, 32], strides = [1, 1]} : vector<2x96xf32> to vector<2x32xf32>
    %57 = vector.extract_strided_slice %39 {offsets = [0, 64], sizes = [2, 32], strides = [1, 1]} : vector<2x96xf32> to vector<2x32xf32>
    %58 = arith.mulf %47, %57 : vector<2x32xf32>
    %59 = arith.addf %56, %58 : vector<2x32xf32>
    %60 = math.tanh %59 : vector<2x32xf32>
    %cst_27 = arith.constant 1.000000e+00 : f32
    %61 = vector.broadcast %cst_27 : f32 to vector<2x32xf32>
    %62 = arith.subf %61, %55 : vector<2x32xf32>
    %63 = arith.mulf %62, %60 : vector<2x32xf32>
    %64 = arith.mulf %55, %4 : vector<2x32xf32>
    %65 = arith.addf %63, %64 : vector<2x32xf32>
    %66 = arith.index_cast %arg1 : i32 to index
    %c0_28 = arith.constant 0 : index
    %c0_29 = arith.constant 0 : index
    %67 = vector.load %arg11[%66, %c0_28, %c0_29] : memref<8x2x32xf32, #tpu.memory_space<vmem>>, vector<1x2x32xf32>
    %68 = vector.shape_cast %67 : vector<1x2x32xf32> to vector<2x32xf32>
    %69 = vector.shape_cast %65 : vector<2x32xf32> to vector<1x2x32xf32>
    tpu.vector_store %arg11[%66, %c0_28, %c0_29], %69 {strides = array<i32>} : memref<8x2x32xf32, #tpu.memory_space<vmem>>, vector<1x2x32xf32>,
    %c0_30 = arith.constant 0 : index
    %c0_31 = arith.constant 0 : index
    %70 = vector.load %arg12[%c0_30, %c0_31] : memref<2x32xf32, #tpu.memory_space<vmem>>, vector<2x32xf32>
    tpu.vector_store %arg12[%c0_30, %c0_31], %65 {strides = array<i32>} : memref<2x32xf32, #tpu.memory_space<vmem>>, vector<2x32xf32>,
    %c0_32 = arith.constant 0 : index
    %c0_33 = arith.constant 0 : index
    %71 = vector.load %arg13[%c0_32, %c0_33] : memref<2x32xf32, #tpu.memory_space<vmem>>, vector<2x32xf32>
    tpu.vector_store %arg13[%c0_32, %c0_33], %65 {strides = array<i32>} : memref<2x32xf32, #tpu.memory_space<vmem>>, vector<2x32xf32>,
    return
  }
  func.func @transform_0(%arg0: i32, %arg1: i32) -> (i32, i32, i32) {
    %c0_i32 = arith.constant 0 : i32
    %c0_i32_0 = arith.constant 0 : i32
    %c0_i32_1 = arith.constant 0 : i32
    return %arg0, %c0_i32, %c0_i32_0 : i32, i32, i32
  }
  func.func @transform_1(%arg0: i32, %arg1: i32) -> (i32, i32, i32) {
    %c0_i32 = arith.constant 0 : i32
    %c0_i32_0 = arith.constant 0 : i32
    %c0_i32_1 = arith.constant 0 : i32
    return %arg0, %c0_i32, %c0_i32_0 : i32, i32, i32
  }
  func.func @transform_2(%arg0: i32, %arg1: i32) -> (i32, i32, i32) {
    %c0_i32 = arith.constant 0 : i32
    %c0_i32_0 = arith.constant 0 : i32
    %c0_i32_1 = arith.constant 0 : i32
    return %c0_i32, %arg0, %c0_i32_0 : i32, i32, i32
  }
  func.func @transform_3(%arg0: i32, %arg1: i32) -> (i32, i32) {
    %c0_i32 = arith.constant 0 : i32
    %c0_i32_0 = arith.constant 0 : i32
    return %arg0, %c0_i32 : i32, i32
  }
  func.func @transform_4(%arg0: i32, %arg1: i32) -> (i32, i32) {
    %c0_i32 = arith.constant 0 : i32
    %c0_i32_0 = arith.constant 0 : i32
    return %arg0, %c0_i32 : i32, i32
  }
  func.func @transform_5(%arg0: i32, %arg1: i32) -> (i32, i32) {
    %c0_i32 = arith.constant 0 : i32
    %c0_i32_0 = arith.constant 0 : i32
    %c0_i32_1 = arith.constant 0 : i32
    return %c0_i32, %c0_i32_0 : i32, i32
  }
  func.func @transform_6(%arg0: i32, %arg1: i32) -> (i32, i32) {
    %c0_i32 = arith.constant 0 : i32
    %c0_i32_0 = arith.constant 0 : i32
    %c0_i32_1 = arith.constant 0 : i32
    return %c0_i32, %c0_i32_0 : i32, i32
  }
  func.func @transform_7(%arg0: i32, %arg1: i32) -> (i32, i32) {
    %c0_i32 = arith.constant 0 : i32
    %c0_i32_0 = arith.constant 0 : i32
    %c0_i32_1 = arith.constant 0 : i32
    return %c0_i32, %c0_i32_0 : i32, i32
  }
  func.func @transform_8(%arg0: i32, %arg1: i32) -> (i32, i32) {
    %c0_i32 = arith.constant 0 : i32
    %c0_i32_0 = arith.constant 0 : i32
    %c0_i32_1 = arith.constant 0 : i32
    return %c0_i32, %c0_i32_0 : i32, i32
  }
  func.func @transform_9(%arg0: i32, %arg1: i32) -> (i32, i32, i32) {
    %c0_i32 = arith.constant 0 : i32
    %c0_i32_0 = arith.constant 0 : i32
    %c0_i32_1 = arith.constant 0 : i32
    return %c0_i32, %arg0, %c0_i32_0 : i32, i32, i32
  }
}

</mosaic_0001>

<bundles_post_ra>
// kernel: show_attend_tell_decode.1
= control target key start
LH: loop header
LB: loop body
LE: loop exit
PB: predicated region body
PF: predicated region fallthrough
CT: control target
= control target key end

     0   :  { %s1363_s30 = smov 0   ;;  %s1365_s10 = smov 0   ;;  %s1791_s0 = inlined_call_operand.vmem [shape: f32[2,49,32], index: 0, kind: input, shape index: {}]   ;;  %s1792_s1 = inlined_call_operand.vmem [shape: f32[2,49,64], index: 1, kind: input, shape index: {}]   ;;  %s1793_s2 = inlined_call_operand.vmem [shape: f32[8,2,96], index: 2, kind: input, shape index: {}]   ;;  %s1794_s3 = inlined_call_operand.vmem [shape: f32[2,32], index: 3, kind: input, shape index: {}]   ;;  %s1795_s4 = inlined_call_operand.vmem [shape: f32[2,32], index: 4, kind: input, shape index: {}]   ;;  %s1796_s5 = inlined_call_operand.vmem [shape: f32[1,32], index: 5, kind: input, shape index: {}]   ;;  %s1797_s6 = inlined_call_operand.vmem [shape: f32[64,96], index: 6, kind: input, shape index: {}]   ;;  %s1798_s7 = inlined_call_operand.vmem [shape: f32[32,96], index: 7, kind: input, shape index: {}]   ;;  %s1799_s8 = inlined_call_operand.vmem [shape: f32[1,96], index: 8, kind: input, shape index: {}]   ;;  %s1800_s9 = inlined_call_operand.vmem [shape: f32[8,2,32], index: 9, kind: output, shape index: {}]  }
   0x1   :  { %s1367_s11 = smov 0  }
   0x2 LB: > { %s28_s12 = sadd.s32 1, %s1303_s10  ;;  %p1177_p0 = scmp.ge.s32.totalorder %s1307_s11, 1  ;;  %s1307_s11 = sphi %s1367_s11, %s19_s11   ;;  %s1303_s10 = sphi %s1365_s10, %s1802_s10   ;;  %s1299_s30 = sphi %s1363_s30, %s1801_s30  }
   0x3   : > { %p29_p1 = scmp.ge.s32.totalorder %s28_s12, 8  ;;  %p340_p2 = scmp.lt.s32.totalorder %s1307_s11, 9 }
   0x5   : > { %s1804_s12 = smov (%p29_p1, %s28_s12), 0  ;;  %p341_p3 = pnand %p1177_p0, %p340_p2 }
   0x6   : > { %p1178_p4 = scmp.ne.s32.totalorder (!%p341_p3), %s1299_s30, 0 }
   0x7   : > { %344 = sbr.rel (%p341_p3) target bundleno = 1292 (0x50c), region = 56 }
   0xc   : > { %427 = sbr.rel (%p1178_p4) target bundleno = 20 (0x14), region = 60 }
  0x11   : > { %v428_v0 = vld [vmem:[%s1794_s3] sm:$0x3]  ;;  %vm429_vm0 = vcmask 254976  }
  0x12   : > { %v431_v1 = vld [vmem:[%s1795_s4] sm:$0x3]  ;;  %430 = vst.msk [vmem:[#allocation2] sm:$0x3] %vm429_vm0, %v428_v0 }
  0x13   : > { %432 = vst.msk [vmem:[#allocation3] sm:$0x3] %vm429_vm0, %v431_v1 }
  0x14 PF: > { %v437_v3 = vld [vmem:[%s1791_s0 + $0x10] sm:$0xff]  ;;  %v435_v5 = vld [vmem:[%s1791_s0] sm:$0xff]  ;;  %v442_v7 = vld [vmem:[%s1791_s0 + $0x38] sm:$0xff]  ;;  %vm501_vm1 = vcmask 261120   ;;  %vm520_vm2 = vcmask 253952   ;;  %vm564_vm3 = vcmask 130112  }
  0x15   : > { %v439_v8 = vld [vmem:[%s1791_s0 + $0x20] sm:$0xff]  ;;  %v436_v9 = vld [vmem:[%s1791_s0 + $0x8] sm:$0xff]  ;;  %v438_v20 = vld [vmem:[%s1791_s0 + $0x18] sm:$0xff]  ;;  %vm568_vm4 = vcmask 195712   ;;  %vm572_vm5 = vcmask 261312   ;;  %vm576_vm6 = vcmask 326912  }
  0x16   : > { %v443_v13 = vld [vmem:[%s1791_s0 + $0x40] sm:$0xff]  ;;  %v444_v19 = vld [vmem:[%s1791_s0 + $0x48] sm:$0xff]  ;;  %v445_v21 = vld [vmem:[%s1791_s0 + $0x50] sm:$0xff]  ;;  %vm580_vm7 = vcmask 392512   ;;  %vm584_vm8 = vcmask 458112   ;;  %vm599_vm9 = vcmask 1041409  }
  0x17   : > { %v1421_v18 = vld [vmem:[%s1796_s5] ss:$0 sm:$0xff]  ;;  %v446_v40 = vld [vmem:[%s1791_s0 + $0x58] sm:$0xff]  ;;  %v440_v42 = vld [vmem:[%s1791_s0 + $0x28] sm:$0xff]  ;;  %vm602_vm10 = vcmask 394240   ;;  %s1310_s16 = smov 64  }
  0x18   : > { %v447_v38 = vld [vmem:[%s1791_s0 + $0x60] sm:$0xff]  ;;  %v441_v54 = vld [vmem:[%s1791_s0 + $0x30] sm:$0x1]  ;;  %v448_v56 = vld [vmem:[%s1791_s0 + $0x68] sm:$0x1]  ;;  %s1179_s17 = sshll.u32 %s1299_s30, 1 }
  0x19   : > { %v433_v2 = vld [vmem:[#allocation2] sm:$0x3]  ;;  %s926_s20 = scalar_lea.vmem %s1793_s2, %s1179_s17  ;;  %s1311_s21 = smov 32  }
  0x1a   : > { %v1393_v4 = vperm.slane %v433_v2, 0  ;;  %v450_v6 = vrot.slane %v433_v2, 1  ;;  %s1312_s22 = smov 96   ;;  %s1039_s25 = scalar_lea.vmem %s1800_s9, %s1179_s17 }
  0x1c   : > { %v457_v10 = vadd.f32 %v1393_v4, %v437_v3  ;;  %v455_v11 = vadd.f32 %v1393_v4, %v435_v5  ;;  %v1409_v12 = vperm.slane %v450_v6, 0  ;;  %v459_v14 = vadd.f32 %v1393_v4, %v439_v8 }
  0x1d   : > { %v456_v16 = vadd.f32 %v1393_v4, %v436_v9  ;;  %v458_v26 = vadd.f32 %v1393_v4, %v438_v20  ;;  %v460_v48 = vadd.f32 %v1393_v4, %v440_v42  ;;  %v461_v58 = vadd.f32 %v1393_v4, %v441_v54 }
  0x1e   : > { %1219 = vtanh.f32 %v457_v10  ;;  %v462_v15 = vadd.f32 %v1409_v12, %v442_v7  ;;  %v463_v17 = vadd.f32 %v1409_v12, %v443_v13  ;;  %v464_v23 = vadd.f32 %v1409_v12, %v444_v19 }
  0x1f   : > { %1221 = vtanh.f32 %v455_v11  ;;  %v465_v29 = vadd.f32 %v1409_v12, %v445_v21  ;;  %v467_v43 = vadd.f32 %v1409_v12, %v447_v38  ;;  %v466_v45 = vadd.f32 %v1409_v12, %v446_v40 }
  0x20   : > { %1223 = vtanh.f32 %v462_v15  ;;  %v468_v61 = vadd.f32 %v1409_v12, %v448_v56  ;;  %v559_v20 = vlaneseq }
  0x21   : > { %1225 = vtanh.f32 %v459_v14 }
  0x22   : > { %1227 = vtanh.f32 %v456_v16 }
  0x23   : > { %1229 = vtanh.f32 %v463_v17 }
  0x24   : > { %v1220_v22 = vpop.eup %1219  ;;  %1231 = vtanh.f32 %v464_v23 }
  0x25   : > { %v1222_v24 = vpop.eup %1221  ;;  %v489_v25 = vmul.f32 %v1220_v22, %v1421_v18  ;;  %1233 = vtanh.f32 %v458_v26 }
  0x26   : > { %v1224_v27 = vpop.eup %1223  ;;  %v487_v28 = vmul.f32 %v1222_v24, %v1421_v18  ;;  %1235 = vtanh.f32 %v465_v29 }
  0x27   : > { %v1226_v30 = vpop.eup %1225  ;;  %v508_v31 = vsel %vm501_vm1, %v489_v25, 0.0  ;;  %v494_v32 = vmul.f32 %v1224_v27, %v1421_v18  ;;  %1237 = vtanh.f32 %v467_v43 }
  0x28   : > { %v1228_v33 = vpop.eup %1227  ;;  %509 = vadd.xlane.f32.xlu2 %v508_v31  ;;  %v502_v34 = vsel %vm501_vm1, %v487_v28, 0.0  ;;  %v491_v37 = vmul.f32 %v1226_v30, %v1421_v18  ;;  %1239 = vtanh.f32 %v466_v45 }
  0x29   : > { %v1230_v35 = vpop.eup %1229  ;;  %503 = vadd.xlane.f32.xlu0 %v502_v34  ;;  %v524_v36 = vsel %vm501_vm1, %v494_v32, 0.0  ;;  %v488_v39 = vmul.f32 %v1228_v33, %v1421_v18  ;;  %1241 = vtanh.f32 %v460_v48 }
  0x2a   : > { %525 = vadd.xlane.f32.xlu1 %v524_v36  ;;  %v495_v41 = vmul.f32 %v1230_v35, %v1421_v18  ;;  %v514_v44 = vsel %vm501_vm1, %v491_v37, 0.0  ;;  %v1232_v46 = vpop.eup %1231  ;;  %1243 = vtanh.f32 %v461_v58 }
  0x2b   : > { %v505_v47 = vsel %vm501_vm1, %v488_v39, 0.0  ;;  %v1234_v49 = vpop.eup %1233  ;;  %v496_v52 = vmul.f32 %v1232_v46, %v1421_v18  ;;  %1245 = vtanh.f32 %v468_v61 }
  0x2c   : > { %v527_v50 = vsel %vm501_vm1, %v495_v41, 0.0  ;;  %v1236_v51 = vpop.eup %1235  ;;  %v490_v53 = vmul.f32 %v1234_v49, %v1421_v18 }
  0x2d   : > { %v497_v55 = vmul.f32 %v1236_v51, %v1421_v18  ;;  %v530_v57 = vsel %vm501_vm1, %v496_v52, 0.0  ;;  %v1238_v59 = vpop.eup %1237 }
  0x2e   : > { %v511_v60 = vsel %vm501_vm1, %v490_v53, 0.0  ;;  %v1240_v62 = vpop.eup %1239  ;;  %v499_v1 = vmul.f32 %v1238_v59, %v1421_v18 }
  0x2f   : > { %v533_v63 = vsel %vm501_vm1, %v497_v55, 0.0  ;;  %v1242_v0 = vpop.eup %1241  ;;  %v498_v2 = vmul.f32 %v1240_v62, %v1421_v18 }
  0x30   : > { %515 = vadd.xlane.f32.xlu2 %v514_v44  ;;  %v492_v3 = vmul.f32 %v1242_v0, %v1421_v18  ;;  %v539_v4 = vsel %vm501_vm1, %v499_v1, 0.0  ;;  %v1244_v6 = vpop.eup %1243 }
  0x31   : > { %506 = vadd.xlane.f32.xlu0 %v505_v47  ;;  %v536_v5 = vsel %vm501_vm1, %v498_v2, 0.0  ;;  %v1246_v8 = vpop.eup %1245  ;;  %v493_v9 = vmul.f32 %v1244_v6, %v1421_v18 }
  0x32   : > { %528 = vadd.xlane.f32.xlu1 %v527_v50  ;;  %v517_v7 = vsel %vm501_vm1, %v492_v3, 0.0  ;;  %v500_v10 = vmul.f32 %v1246_v8, %v1421_v18  ;;  %v1495_v18 = vand.u32 127, %v559_v20 }
  0x33   : > { %v521_v11 = vsel %vm520_vm2, %v493_v9, 0.0 }
  0x34   : > { %v542_v12 = vsel %vm520_vm2, %v500_v10, 0.0  ;;  %v1502_v24 = vadd.s32 4294967288, %v1495_v18  ;;  %v1505_v25 = vadd.s32 4294967280, %v1495_v18  ;;  %v1512_v28 = vadd.s32 4294967272, %v1495_v18 }
  0x35   : > { %v1527_v35 = vadd.s32 4294967264, %v1495_v18  ;;  %v1530_v36 = vadd.s32 4294967256, %v1495_v18  ;;  %v1544_v44 = vadd.s32 4294967248, %v1495_v18 }
  0x38   : > { %531 = vadd.xlane.f32.xlu2 %v530_v57 }
  0x39   : > { %512 = vadd.xlane.f32.xlu0 %v511_v60 }
  0x3a   : > { %534 = vadd.xlane.f32.xlu1 %v533_v63  ;;  %v1309_v63 = vmov 0  }
  0x3b   : > { %1216 = vset.pattern.permute.xlu2 %v1309_v63  ;;  %1215 = vset.pattern.permute.xlu1 %v1309_v63 }
  0x3c   : > { %1214 = vset.pattern.permute.xlu0 %v1309_v63 }
  0x40   : > { %540 = vadd.xlane.f32.xlu2 %v539_v4 }
  0x41   : > { %537 = vadd.xlane.f32.xlu0 %v536_v5 }
  0x42   : > { %518 = vadd.xlane.f32.xlu1 %v517_v7 }
  0x49   : > { %522 = vadd.xlane.f32.xlu0 %v521_v11 }
  0x4a   : > { %543 = vadd.xlane.f32.xlu1 %v542_v12 }
  0x9b   : > { %v1481_v13 = vpop.xlane.xlu2 %509 }
  0x9c   : > { %v1483_v14 = vpop.xlane.xlu0 %503  ;;  %v567_v34 = vperm.slane %v1481_v13, %v1505_v25 }
  0x9d   : > { %v1485_v15 = vpop.xlane.xlu1 %525  ;;  %v561_v31 = vperm.slane %v1483_v14, %v1495_v18 }
  0x9e   : > { %v586_v32 = vperm.slane %v1485_v15, %v1495_v18 }
  0xa3   : > { %v1487_v16 = vpop.xlane.xlu2 %515 }
  0xa4   : > { %v1489_v17 = vpop.xlane.xlu0 %506  ;;  %v575_v45 = vperm.slane %v1487_v16, %v1527_v35 }
  0xa5   : > { %v1491_v19 = vpop.xlane.xlu1 %528  ;;  %v563_v26 = vperm.slane %v1489_v17, %v1502_v24 }
  0xa6   : > { %v587_v27 = vperm.slane %v1491_v19, %v1502_v24 }
  0xa7   : > { %v565_v37 = vsel %vm564_vm3, %v563_v26, %v561_v31 }
  0xa8   : > { %v588_v38 = vsel %vm564_vm3, %v587_v27, %v586_v32  ;;  %v569_v46 = vsel %vm568_vm4, %v567_v34, %v565_v37 }
  0xab   : > { %v1499_v23 = vpop.xlane.xlu2 %531 }
  0xac   : > { %v1493_v21 = vpop.xlane.xlu0 %512  ;;  %v589_v29 = vperm.slane %v1499_v23, %v1505_v25 }
  0xad   : > { %v1497_v22 = vpop.xlane.xlu1 %534  ;;  %v571_v39 = vperm.slane %v1493_v21, %v1512_v28 }
  0xae   : > { %v591_v40 = vperm.slane %v1497_v22, %v1512_v28  ;;  %v590_v41 = vsel %vm568_vm4, %v589_v29, %v588_v38 }
  0xaf   : > { %v573_v47 = vsel %vm572_vm5, %v571_v39, %v569_v46 }
  0xb0   : > { %v592_v48 = vsel %vm572_vm5, %v591_v40, %v590_v41  ;;  %v577_v56 = vsel %vm576_vm6, %v575_v45, %v573_v47 }
  0xb3   : > { %v1541_v43 = vpop.xlane.xlu2 %540 }
  0xb4   : > { %v1516_v30 = vpop.xlane.xlu0 %537  ;;  %v595_v49 = vperm.slane %v1541_v43, %v1530_v36 }
  0xb5   : > { %v1522_v33 = vpop.xlane.xlu1 %518  ;;  %v593_v42 = vperm.slane %v1516_v30, %v1527_v35 }
  0xb6   : > { %v579_v50 = vperm.slane %v1522_v33, %v1530_v36 }
  0xb7   : > { %v594_v51 = vsel %vm576_vm6, %v593_v42, %v592_v48 }
  0xb8   : > { %v581_v57 = vsel %vm580_vm7, %v579_v50, %v577_v56  ;;  %v596_v58 = vsel %vm580_vm7, %v595_v49, %v594_v51 }
  0xbc   : > { %v1556_v52 = vpop.xlane.xlu0 %522 }
  0xbd   : > { %v583_v53 = vperm.slane %v1556_v52, %v1544_v44  ;;  %v1560_v54 = vpop.xlane.xlu1 %543 }
  0xbe   : > { %v597_v55 = vperm.slane %v1560_v54, %v1544_v44 }
  0xbf   : > { %v585_v59 = vsel %vm584_vm8, %v583_v53, %v581_v57 }
  0xc0   : > { %v598_v60 = vsel %vm584_vm8, %v597_v55, %v596_v58 }
  0xc1   : > { %v600_v61 = vsel %vm599_vm9, %v598_v60, %v585_v59 }
  0xc2   : > { %v603_v62 = vsel %vm602_vm10, %v600_v61, -inf }
  0xc3   : > { %604 = vmax.xlane.f32.xlu2 %v603_v62 }
 0x136   : > { %v605_v0 = vpop.xlane.xlu2 %604 }
 0x137   : > { %v607_v1 = vperm.slane %v605_v0, 0  ;;  %v608_v2 = vperm.slane %v605_v0, 1 }
 0x139   : > { %v618_v3 = vsub.f32 %v1485_v15, %v608_v2  ;;  %v612_v4 = vsub.f32 %v1489_v17, %v607_v1  ;;  %v611_v5 = vsub.f32 %v1483_v14, %v607_v1  ;;  %v619_v9 = vsub.f32 %v1491_v19, %v608_v2 }
 0x13a   : > { %v613_v10 = vsub.f32 %v1481_v13, %v607_v1  ;;  %v621_v11 = vsub.f32 %v1497_v22, %v608_v2  ;;  %v620_v19 = vsub.f32 %v1499_v23, %v608_v2  ;;  %v614_v13 = vsub.f32 %v1493_v21, %v607_v1 }
 0x13b   : > { %v639_v6 = vmul.f32 1.442695, %v618_v3  ;;  %v627_v7 = vmul.f32 1.442695, %v612_v4  ;;  %v625_v8 = vmul.f32 1.442695, %v611_v5  ;;  %v616_v22 = vsub.f32 %v1522_v33, %v607_v1 }
 0x13c   : > { %v641_v12 = vmul.f32 1.442695, %v619_v9  ;;  %v629_v20 = vmul.f32 1.442695, %v613_v10  ;;  %v645_v15 = vmul.f32 1.442695, %v621_v11  ;;  %v615_v23 = vsub.f32 %v1487_v16, %v607_v1 }
 0x13d   : > { %1247 = vpow2.f32 %v639_v6  ;;  %v643_v27 = vmul.f32 1.442695, %v620_v19  ;;  %v631_v29 = vmul.f32 1.442695, %v614_v13  ;;  %v635_v32 = vmul.f32 1.442695, %v616_v22 }
 0x13e   : > { %1249 = vpow2.f32 %v627_v7  ;;  %v622_v21 = vsub.f32 %v1516_v30, %v608_v2  ;;  %v624_v33 = vsub.f32 %v1560_v54, %v608_v2  ;;  %v633_v38 = vmul.f32 1.442695, %v615_v23 }
 0x13f   : > { %1251 = vpow2.f32 %v625_v8  ;;  %v623_v16 = vsub.f32 %v1541_v43, %v608_v2  ;;  %v617_v30 = vsub.f32 %v1556_v52, %v607_v1 }
 0x140   : > { %1253 = vpow2.f32 %v641_v12  ;;  %v647_v39 = vmul.f32 1.442695, %v622_v21  ;;  %v651_v41 = vmul.f32 1.442695, %v624_v33 }
 0x141   : > { %1255 = vpow2.f32 %v629_v20  ;;  %v649_v46 = vmul.f32 1.442695, %v623_v16  ;;  %v637_v47 = vmul.f32 1.442695, %v617_v30 }
 0x142   : > { %1257 = vpow2.f32 %v645_v15 }
 0x143   : > { %v1577_v26 = vpop.eup %1247  ;;  %1259 = vpow2.f32 %v643_v27 }
 0x144   : > { %v1579_v17 = vpop.eup %1249  ;;  %689 = vperm.xlu2 %1216, %v1577_v26   ;;  %1261 = vpow2.f32 %v631_v29 }
 0x145   : > { %v1582_v14 = vpop.eup %1251  ;;  %671 = vperm.xlu1 %1215, %v1579_v17   ;;  %1263 = vpow2.f32 %v635_v32 }
 0x146   : > { %668 = vperm.xlu0 %1214, %v1582_v14   ;;  %v1589_v31 = vpop.eup %1253  ;;  %1265 = vpow2.f32 %v633_v38 }
 0x147   : > { %v1591_v34 = vpop.eup %1255  ;;  %1267 = vpow2.f32 %v647_v39 }
 0x148   : > { %v1594_v37 = vpop.eup %1257  ;;  %1269 = vpow2.f32 %v651_v41 }
 0x149   : > { %v1601_v40 = vpop.eup %1259  ;;  %1271 = vpow2.f32 %v649_v46 }
 0x14a   : > { %v1603_v42 = vpop.eup %1261  ;;  %1273 = vpow2.f32 %v637_v47 }
 0x14b   : > { %v1606_v45 = vpop.eup %1263 }
 0x14c   : > { %692 = vperm.xlu2 %1216, %v1589_v31   ;;  %v1612_v48 = vpop.eup %1265 }
 0x14d   : > { %674 = vperm.xlu1 %1215, %v1591_v34   ;;  %v1614_v49 = vpop.eup %1267 }
 0x14e   : > { %698 = vperm.xlu0 %1214, %v1594_v37   ;;  %v1617_v50 = vpop.eup %1269 }
 0x14f   : > { %v1621_v43 = vpop.eup %1271 }
 0x150   : > { %v1623_v51 = vpop.eup %1273 }
 0x154   : > { %695 = vperm.xlu2 %1216, %v1601_v40  }
 0x155   : > { %677 = vperm.xlu1 %1215, %v1603_v42  }
 0x156   : > { %683 = vperm.xlu0 %1214, %v1606_v45  }
 0x15c   : > { %680 = vperm.xlu2 %1216, %v1612_v48  }
 0x15d   : > { %701 = vperm.xlu1 %1215, %v1614_v49  }
 0x15e   : > { %707 = vperm.xlu0 %1214, %v1617_v50  }
 0x164   : > { %704 = vperm.xlu2 %1216, %v1621_v43  }
 0x165   : > { %686 = vperm.xlu1 %1215, %v1623_v51  }
 0x19e   : > { %v690_v52 = vpop.permute.xlu2 %689 }
 0x19f   : > { %v722_v3 = vperm.slane %v690_v52, %v1495_v18 }
 0x1a6   : > { %v693_v53 = vpop.permute.xlu2 %692 }
 0x1a7   : > { %v723_v62 = vperm.slane %v693_v53, %v1502_v24 }
 0x1a9   : > { %v724_v8 = vsel %vm564_vm3, %v723_v62, %v722_v3 }
 0x1ae   : > { %v696_v56 = vpop.permute.xlu2 %695 }
 0x1af   : > { %v725_v1 = vperm.slane %v696_v56, %v1505_v25 }
 0x1b6   : > { %v681_v60 = vpop.permute.xlu2 %680 }
 0x1b7   : > { %v672_v54 = vpop.permute.xlu1 %671  ;;  %v716_v12 = vperm.slane %v681_v60, %v1527_v35 }
 0x1b8   : > { %v669_v55 = vpop.permute.xlu0 %668  ;;  %v710_v63 = vperm.slane %v672_v54, %v1502_v24  ;;  %v726_v24 = vsel %vm568_vm4, %v725_v1, %v724_v8 }
 0x1b9   : > { %v709_v0 = vperm.slane %v669_v55, %v1495_v18 }
 0x1bb   : > { %v711_v9 = vsel %vm564_vm3, %v710_v63, %v709_v0 }
 0x1be   : > { %v705_v10 = vpop.permute.xlu2 %704 }
 0x1bf   : > { %v675_v57 = vpop.permute.xlu1 %674  ;;  %v731_v20 = vperm.slane %v705_v10, %v1530_v36 }
 0x1c0   : > { %v699_v58 = vpop.permute.xlu0 %698  ;;  %v712_v2 = vperm.slane %v675_v57, %v1505_v25 }
 0x1c1   : > { %v727_v4 = vperm.slane %v699_v58, %v1512_v28 }
 0x1c2   : > { %v713_v11 = vsel %vm568_vm4, %v712_v2, %v711_v9  ;;  %vm897_vm4 = vcmask 516096  }
 0x1c3   : > { %v728_v25 = vsel %vm572_vm5, %v727_v4, %v726_v24 }
 0x1c7   : > { %v678_v59 = vpop.permute.xlu1 %677 }
 0x1c8   : > { %v684_v61 = vpop.permute.xlu0 %683  ;;  %v714_v5 = vperm.slane %v678_v59, %v1512_v28 }
 0x1c9   : > { %v718_v13 = vperm.slane %v684_v61, %v1530_v36 }
 0x1ca   : > { %v715_v18 = vsel %vm572_vm5, %v714_v5, %v713_v11 }
 0x1cb   : > { %v717_v19 = vsel %vm576_vm6, %v716_v12, %v715_v18 }
 0x1cc   : > { %v719_v23 = vsel %vm580_vm7, %v718_v13, %v717_v19  ;;  %v789_v19 = vld [vmem:[%s1792_s1 + $0x10] sm:$0xff]  ;;  %v935_v13 = vld [vmem:[%s1797_s6 + $0x38] sm:$0xff] }
 0x1cd   : > { %949 = vmatpush.msra.mxu0 %v935_v13 }
 0x1cf   : > { %v702_v6 = vpop.permute.xlu1 %701 }
 0x1d0   : > { %v729_v7 = vperm.slane %v702_v6, %v1527_v35  ;;  %v708_v15 = vpop.permute.xlu0 %707 }
 0x1d1   : > { %v733_v29 = vperm.slane %v708_v15, %v1544_v44 }
 0x1d2   : > { %v730_v28 = vsel %vm576_vm6, %v729_v7, %v728_v25 }
 0x1d3   : > { %v732_v27 = vsel %vm580_vm7, %v731_v20, %v730_v28  ;;  %v788_v28 = vld [vmem:[%s1792_s1 + $0x8] sm:$0xff]  ;;  %v787_v20 = vld [vmem:[%s1792_s1] sm:$0xff] }
 0x1d4   : > { %v734_v21 = vsel %vm584_vm8, %v733_v29, %v732_v27  ;;  %v795_v29 = vld [vmem:[%s1792_s1 + $0x40] sm:$0xff] }
 0x1d7   : > { %v687_v22 = vpop.permute.xlu1 %686 }
 0x1d8   : > { %v720_v32 = vperm.slane %v687_v22, %v1544_v44  ;;  %v934_v22 = vld [vmem:[%s1797_s6 + $0x30] sm:$0xff] }
 0x1d9   : > { %950 = vmatpush.msra.mxu0 %v934_v22 }
 0x1da   : > { %v721_v35 = vsel %vm584_vm8, %v720_v32, %v719_v23  ;;  %v794_v32 = vld [vmem:[%s1792_s1 + $0x38] sm:$0xff] }
 0x1db   : > { %v735_v33 = vsel %vm599_vm9, %v734_v21, %v721_v35  ;;  %v790_v23 = vld [vmem:[%s1792_s1 + $0x18] sm:$0xff]  ;;  %v933_v35 = vld [vmem:[%s1797_s6 + $0x28] sm:$0xff] }
 0x1dc   : > { %v737_v38 = vsel %vm602_vm10, %v735_v33, 0.0  ;;  %951 = vmatpush.msra.mxu0 %v933_v35 }
 0x1dd   : > { %738 = vadd.xlane.f32.xlu2 %v737_v38  ;;  %v796_v38 = vld [vmem:[%s1792_s1 + $0x48] sm:$0xff] }
 0x250   : > { %v739_v39 = vpop.xlane.xlu2 %738 }
 0x251   : > { %v741_v36 = vperm.slane %v739_v39, 0  ;;  %v742_v41 = vperm.slane %v739_v39, 1 }
 0x253   : > { %1275 = vrcp.f32 %v741_v36  ;;  %v756_v52 = vand.u32 2147483648, %v741_v36  ;;  %v754_v55 = vand.u32 2147483647, %v741_v36  ;;  %v777_v56 = vand.u32 2147483648, %v742_v41 }
 0x254   : > { %1277 = vrcp.f32 %v742_v41  ;;  %v775_v58 = vand.u32 2147483647, %v742_v41  ;;  %vm750_vm13 = vweird.f32 %v741_v36  ;;  %vm771_vm15 = vweird.f32 %v742_v41 }
 0x255   : > { %v757_v60 = vor.u32 1.1754944e-38, %v756_v52  ;;  %vm755_vm0 = vcmp.eq.f32.partialorder %v754_v55, 8.507059e+37  ;;  %v778_v63 = vor.u32 1.1754944e-38, %v777_v56  ;;  %v797_v52 = vld [vmem:[%s1792_s1 + $0x50] sm:$0xff] }
 0x256   : > { %vm776_vm3 = vcmp.eq.f32.partialorder %v775_v58, 8.507059e+37  ;;  %v798_v58 = vld [vmem:[%s1792_s1 + $0x58] sm:$0xff] }
 0x259   : > { %v1276_v16 = vpop.eup %1275 }
 0x25a   : > { %v1278_v30 = vpop.eup %1277  ;;  %v746_v46 = vmul.f32 %v1276_v16, %v741_v36  ;;  %vm751_vm11 = vweird.f32 %v1276_v16  ;;  %v791_v36 = vld [vmem:[%s1792_s1 + $0x20] sm:$0xff] }
 0x25b   : > { %v767_v44 = vmul.f32 %v1278_v30, %v742_v41  ;;  %vm772_vm12 = vweird.f32 %v1278_v30  ;;  %vm752_vm14 = vmor %vm750_vm13, %vm751_vm11 }
 0x25c   : > { %v747_v47 = vsub.f32 1.0, %v746_v46  ;;  %vm773_vm2 = vmor %vm771_vm15, %vm772_vm12 }
 0x25d   : > { %v768_v53 = vsub.f32 1.0, %v767_v44 }
 0x25e   : > { %v748_v54 = vmul.f32 %v1276_v16, %v747_v47 }
 0x25f   : > { %v769_v57 = vmul.f32 %v1278_v30, %v768_v53  ;;  %v931_v53 = vld [vmem:[%s1797_s6 + $0x18] sm:$0xff] }
 0x260   : > { %v749_v59 = vadd.f32 %v1276_v16, %v748_v54 }
 0x261   : > { %v770_v61 = vadd.f32 %v1278_v30, %v769_v57 }
 0x262   : > { %v753_v62 = vsel %vm752_vm14, %v1276_v16, %v749_v59  ;;  %v932_v16 = vld [vmem:[%s1797_s6 + $0x20] sm:$0xff]  ;;  %v930_v59 = vld [vmem:[%s1797_s6 + $0x10] sm:$0xff] }
 0x263   : > { %v774_v0 = vsel %vm773_vm2, %v1278_v30, %v770_v61  ;;  %v758_v1 = vsel %vm755_vm0, %v757_v60, %v753_v62  ;;  %952 = vmatpush.msra.mxu0 %v932_v16 }
 0x264   : > { %v779_v2 = vsel %vm776_vm3, %v778_v63, %v774_v0  ;;  %v760_v3 = vmul.f32 %v1579_v17, %v758_v1  ;;  %v759_v4 = vmul.f32 %v1582_v14, %v758_v1  ;;  %v761_v9 = vmul.f32 %v1591_v34, %v758_v1  ;;  %v965_v17 = vld [vmem:[%s1798_s7 + $0x18] sm:$0xff] }
 0x265   : > { %v785_v5 = vmul.f32 %v1621_v43, %v779_v2  ;;  %v781_v6 = vmul.f32 %v1589_v31, %v779_v2  ;;  %v780_v7 = vmul.f32 %v1577_v26, %v779_v2  ;;  %v782_v8 = vmul.f32 %v1601_v40, %v779_v2  ;;  %985 = vmatpush.msra.mxu1 %v965_v17 }
 0x266   : > { %808 = vperm.xlu0 %1214, %v760_v3   ;;  %803 = vperm.xlu1 %1215, %v759_v4   ;;  %v783_v14 = vmul.f32 %v1594_v37, %v779_v2  ;;  %v762_v43 = vmul.f32 %v1603_v42, %v758_v1  ;;  %v784_v26 = vmul.f32 %v1614_v49, %v779_v2  ;;  %v964_v37 = vld [vmem:[%s1798_s7 + $0x10] sm:$0xff]  ;;  %v963_v42 = vld [vmem:[%s1798_s7 + $0x8] sm:$0xff] }
 0x267   : > { %863 = vperm.xlu2 %1216, %v785_v5   ;;  %v763_v31 = vmul.f32 %v1612_v48, %v758_v1  ;;  %v765_v34 = vmul.f32 %v1623_v51, %v758_v1  ;;  %v764_v40 = vmul.f32 %v1606_v45, %v758_v1  ;;  %v786_v24 = vmul.f32 %v1617_v50, %v779_v2  ;;  %v962_v48 = vld [vmem:[%s1798_s7] sm:$0xff]  ;;  %v793_v1 = vld [vmem:[%s1792_s1 + $0x30] sm:$0x1]  ;;  %v792_v2 = vld [vmem:[%s1792_s1 + $0x28] sm:$0xff] }
 0x268   : > { %986 = vmatpush.msra.mxu1 %v964_v37  ;;  %v1681_v45 = vld [vmem:[#allocation3] sm:$0x3]  ;;  %953 = vmatpush.msra.mxu0 %v931_v53  ;;  %v929_v3 = vld [vmem:[%s1797_s6 + $0x8] sm:$0xff] }
 0x26a   : > { %987 = vmatpush.msra.mxu1 %v963_v42  ;;  %954 = vmatpush.msra.mxu0 %v930_v59 }
 0x26c   : > { %988 = vmatpush.msra.mxu1 %v962_v48  ;;  %955 = vmatpush.msra.mxu0 %v929_v3 }
 0x26d   : > { %1181 = vmatmul.msk.f32.vlgmr.msra.gmra.mxu1 %vm501_vm1, %v1681_v45  ;;  %vm885_vm1 = vcmask 523264  }
 0x26e   : > { %843 = vperm.xlu0 %1214, %v781_v6   ;;  %838 = vperm.xlu1 %1215, %v780_v7  }
 0x276   : > { %848 = vperm.xlu0 %1214, %v782_v8   ;;  %813 = vperm.xlu1 %1215, %v761_v9  }
 0x27e   : > { %853 = vperm.xlu0 %1214, %v783_v14   ;;  %818 = vperm.xlu1 %1215, %v762_v43   ;;  %v928_v14 = vld [vmem:[%s1797_s6] sm:$0xff] }
 0x27f   : > { %956 = vmatpush.msra.mxu0 %v928_v14 }
 0x286   : > { %858 = vperm.xlu0 %1214, %v784_v26   ;;  %823 = vperm.xlu1 %1215, %v763_v31  }
 0x28e   : > { %833 = vperm.xlu0 %1214, %v765_v34   ;;  %828 = vperm.xlu1 %1215, %v764_v40   ;;  %v799_v34 = vld [vmem:[%s1792_s1 + $0x60] sm:$0xff] }
 0x296   : > { %868 = vperm.xlu1 %1215, %v786_v24  }
 0x2c1   : > { %v864_v40 = vpop.permute.xlu2 %863 }
 0x2d8   : > { %v809_v49 = vpop.permute.xlu0 %808  ;;  %v804_v50 = vpop.permute.xlu1 %803 }
 0x2d9   : > { %v872_v15 = vmul.f32 %v809_v49, %v788_v28  ;;  %v871_v27 = vmul.f32 %v804_v50, %v787_v20 }
 0x2db   : > { %v887_v33 = vsel %vm885_vm1, %v872_v15, 0.0  ;;  %v886_v30 = vsel %vm885_vm1, %v871_v27, 0.0 }
 0x2dc   : > { %v888_v57 = vadd.f32 %v887_v33, %v886_v30  ;;  %v1218_v30 = vld [vmem:[%s1799_s8] ss:$0 sm:$0xff] }
 0x2e0   : > { %v844_v51 = vpop.permute.xlu0 %843  ;;  %v839_v10 = vpop.permute.xlu1 %838 }
 0x2e1   : > { %v879_v46 = vmul.f32 %v844_v51, %v795_v29  ;;  %v878_v44 = vmul.f32 %v839_v10, %v794_v32  ;;  %v883_v51 = vmul.f32 %v864_v40, %v799_v34 }
 0x2e3   : > { %v907_v60 = vsel %vm885_vm1, %v879_v46, 0.0  ;;  %v906_v61 = vsel %vm885_vm1, %v878_v44, 0.0  ;;  %v915_v20 = vsel %vm885_vm1, %v883_v51, 0.0 }
 0x2e4   : > { %v908_v7 = vadd.f32 %v907_v60, %v906_v61 }
 0x2e8   : > { %v849_v11 = vpop.permute.xlu0 %848  ;;  %v814_v25 = vpop.permute.xlu1 %813 }
 0x2e9   : > { %v873_v21 = vmul.f32 %v814_v25, %v789_v19  ;;  %v880_v54 = vmul.f32 %v849_v11, %v796_v38 }
 0x2ea   : > { %v990_v46 = vpop.f32.mrf.mxu1 }
 0x2eb   : > { %v889_v55 = vsel %vm885_vm1, %v873_v21, 0.0  ;;  %v909_v4 = vsel %vm885_vm1, %v880_v54, 0.0  ;;  %v991_v44 = vadd.f32 %v1218_v30, %v990_v46 }
 0x2ec   : > { %v890_v0 = vadd.f32 %v889_v55, %v888_v57  ;;  %v910_v24 = vadd.f32 %v909_v4, %v908_v7 }
 0x2ed   : > { %1014 = vrot.lane.b32.xlu0 %v991_v44, %s1310_s16 }
 0x2f0   : > { %v854_v18 = vpop.permute.xlu0 %853  ;;  %v819_v12 = vpop.permute.xlu1 %818 }
 0x2f1   : > { %v874_v47 = vmul.f32 %v819_v12, %v790_v23  ;;  %v881_v62 = vmul.f32 %v854_v18, %v797_v52  ;;  %v800_v18 = vld [vmem:[%s1792_s1 + $0x68] sm:$0x1] }
 0x2f3   : > { %v891_v63 = vsel %vm885_vm1, %v874_v47, 0.0  ;;  %v911_v43 = vsel %vm885_vm1, %v881_v62, 0.0  ;;  %v927_v47 = vld [vmem:[%s926_s20] sm:$0x3] }
 0x2f4   : > { %v892_v8 = vadd.f32 %v891_v63, %v890_v0  ;;  %v912_v49 = vadd.f32 %v911_v43, %v910_v24 }
 0x2f8   : > { %v859_v39 = vpop.permute.xlu0 %858  ;;  %v824_v41 = vpop.permute.xlu1 %823 }
 0x2f9   : > { %v875_v56 = vmul.f32 %v824_v41, %v791_v36  ;;  %v882_v5 = vmul.f32 %v859_v39, %v798_v58 }
 0x2fb   : > { %v893_v6 = vsel %vm885_vm1, %v875_v56, 0.0  ;;  %v913_v42 = vsel %vm885_vm1, %v882_v5, 0.0 }
 0x2fc   : > { %v894_v37 = vadd.f32 %v893_v6, %v892_v8  ;;  %v914_v11 = vadd.f32 %v913_v42, %v912_v49 }
 0x2fe   : > { %v916_v13 = vadd.f32 %v915_v20, %v914_v11 }
 0x300   : > { %v834_v9 = vpop.permute.xlu0 %833  ;;  %v829_v17 = vpop.permute.xlu1 %828 }
 0x301   : > { %v877_v26 = vmul.f32 %v834_v9, %v793_v1  ;;  %v876_v31 = vmul.f32 %v829_v17, %v792_v2 }
 0x303   : > { %v895_v48 = vsel %vm885_vm1, %v876_v31, 0.0  ;;  %v898_v10 = vsel %vm897_vm4, %v877_v26, 0.0 }
 0x304   : > { %v896_v50 = vadd.f32 %v895_v48, %v894_v37 }
 0x306   : > { %v899_v25 = vadd.f32 %v898_v10, %v896_v50 }
 0x308   : > { %v900_v12 = vrot.slane %v899_v25, 4  ;;  %v869_v28 = vpop.permute.xlu1 %868 }
 0x309   : > { %v884_v15 = vmul.f32 %v869_v28, %v800_v18 }
 0x30a   : > { %v901_v19 = vadd.f32 %v900_v12, %v899_v25 }
 0x30b   : > { %v917_v22 = vsel %vm897_vm4, %v884_v15, 0.0 }
 0x30c   : > { %v902_v27 = vrot.slane %v901_v19, 2  ;;  %v918_v29 = vadd.f32 %v917_v22, %v916_v13 }
 0x30e   : > { %v919_v32 = vrot.slane %v918_v29, 4  ;;  %v903_v35 = vadd.f32 %v902_v27, %v901_v19 }
 0x310   : > { %v920_v23 = vadd.f32 %v919_v32, %v918_v29  ;;  %v904_v38 = vrot.slane %v903_v35, 1 }
 0x312   : > { %v921_v21 = vrot.slane %v920_v23, 2  ;;  %v905_v36 = vadd.f32 %v904_v38, %v903_v35 }
 0x314   : > { %v922_v33 = vadd.f32 %v921_v21, %v920_v23 }
 0x316   : > { %v923_v39 = vrot.slane %v922_v33, 1 }
 0x318   : > { %v924_v41 = vadd.f32 %v923_v39, %v922_v33 }
 0x31a   : > { %v938_v16 = vsel %vm599_vm9, %v924_v41, %v905_v36  ;;  %vm1040_vm9 = vcmask 254976  }
 0x31b   : > { %1180 = vmatmul.msk.f32.vlgmr.msra.gmra.mxu0 %vm885_vm1, %v938_v16 }
 0x35f   : > { %v1015_v1 = vpop.permute.xlu0 %1014 }
 0x398   : > { %v958_v52 = vpop.f32.mrf.mxu0 }
 0x399   : > { %v961_v53 = vadd.f32 %v958_v52, %v927_v47 }
 0x39b   : > { %v993_v54 = vadd.f32 %v991_v44, %v961_v53 }
 0x39d   : > { %v1182_v55 = vmul.f32 -1.442695, %v993_v54 }
 0x39f   : > { %1279 = vpow2.f32 %v1182_v55 }
 0x3a5   : > { %v1280_v56 = vpop.eup %1279 }
 0x3a6   : > { %v997_v57 = vadd.f32 1.0, %v1280_v56 }
 0x3a8   : > { %1281 = vrcp.f32 %v997_v57  ;;  %v1009_v61 = vand.u32 2147483648, %v997_v57  ;;  %v1007_v63 = vand.u32 2147483647, %v997_v57  ;;  %vm1003_vm6 = vweird.f32 %v997_v57 }
 0x3aa   : > { %v1010_v2 = vor.u32 1.1754944e-38, %v1009_v61  ;;  %vm1008_vm8 = vcmp.eq.f32.partialorder %v1007_v63, 8.507059e+37 }
 0x3ae   : > { %v1282_v58 = vpop.eup %1281 }
 0x3af   : > { %v999_v59 = vmul.f32 %v1282_v58, %v997_v57  ;;  %vm1004_vm5 = vweird.f32 %v1282_v58 }
 0x3b0   : > { %vm1005_vm7 = vmor %vm1003_vm6, %vm1004_vm5 }
 0x3b1   : > { %v1000_v60 = vsub.f32 1.0, %v999_v59 }
 0x3b3   : > { %v1001_v62 = vmul.f32 %v1282_v58, %v1000_v60 }
 0x3b5   : > { %v1002_v0 = vadd.f32 %v1282_v58, %v1001_v62 }
 0x3b7   : > { %v1006_v3 = vsel %vm1005_vm7, %v1282_v58, %v1002_v0 }
 0x3b8   : > { %v1011_v4 = vsel %vm1008_vm8, %v1010_v2, %v1006_v3 }
 0x3b9   : > { %v1017_v5 = vmul.f32 %v1015_v1, %v1011_v4  ;;  %v1024_v17 = vsub.f32 1.0, %v1011_v4 }
 0x3bb   : > { %1019 = vrot.lane.b32.xlu1 %v1017_v5, %s1310_s16 }
 0x3c3   : > { %1030 = vrot.lane.b32.xlu1 %v1681_v45, %s1311_s21 }
 0x42d   : > { %v1020_v6 = vpop.permute.xlu1 %1019 }
 0x42e   : > { %v1022_v7 = vadd.f32 %v1020_v6, %v961_v53 }
 0x430   : > { %1283 = vtanh.f32 %v1022_v7 }
 0x435   : > { %v1031_v9 = vpop.permute.xlu1 %1030 }
 0x436   : > { %v1284_v8 = vpop.eup %1283  ;;  %v1033_v43 = vmul.f32 %v1031_v9, %v1011_v4 }
 0x437   : > { %1026 = vrot.lane.b32.xlu0 %v1284_v8, %s1312_s22 }
 0x4a9   : > { %v1027_v14 = vpop.permute.xlu0 %1026 }
 0x4aa   : > { %v1029_v26 = vmul.f32 %v1027_v14, %v1024_v17 }
 0x4ac   : > { %v1034_v31 = vadd.f32 %v1033_v43, %v1029_v26 }
 0x4ae   : > { %1036 = vrot.lane.b32.xlu2 %v1034_v31, %s1312_s22 }
 0x508   : > { %v1037_v45 = vpop.permute.xlu2 %1036 }
 0x509   : > { %1041 = vst.msk [vmem:[%s1039_s25] sm:$0x3] %vm1040_vm9, %v1037_v45 }
 0x50a   : > { %1042 = vst.msk [vmem:[#allocation2] sm:$0x3] %vm1040_vm9, %v1037_v45 }
 0x50b   : > { %1043 = vst.msk [vmem:[#allocation3] sm:$0x3] %vm1040_vm9, %v1037_v45 }
 0x50c PF: > { %s19_s11 = sadd.s32 1, %s1307_s11   ;;  %s1801_s30 = smov %s1303_s10 }
 0x50d   : > { %p16_p5 = scmp.ge.s32.totalorder %s19_s11, 10   ;;  %s1802_s10 = smov %s1804_s12 }
 0x50f   :  { %18 = sbr.rel (!%p16_p5) target bundleno = 2 (0x2), region = 104 }

</bundles_post_ra>
